<compile_context>
chip_gen: v6e
topology: v6e:2x2x1
jax: 0.10.0
libtpu: 0.0.40
codegen_flags: <defaults>
</compile_context>

<pallas_src>
import functools

import jax
import jax.numpy as jnp
from jax.experimental import pallas as pl
from jax.experimental.pallas import tpu as pltpu


# ---------------------------------------------------------------------------
# helpers
# ---------------------------------------------------------------------------
def _cdiv(a, b):
    return -(-a // b)


def _round_up(x, m):
    return ((x + m - 1) // m) * m


def _choose_batch_tiles(B, batch_tile):
    """Pick (num_blocks, tile, padded_B): minimal padding, tile % 8 == 0, and at
    least 2 blocks along the 'parallel' axis when the batch allows it (v7x: 2 TCs)."""
    min_blocks = 2 if B >= 16 else 1
    nb = max(_cdiv(B, batch_tile), min_blocks)
    TB = _round_up(_cdiv(B, nb), 8)
    return nb, TB, nb * TB


def pack_params(params, use_bf16_matmul=True):
    """Re-pack raw params once (hoisted out of the per-call wrappers).

    - W_ih / W_hh are zero-padded along the output axis from 3H to G=round_up(3H,128)
      so gx = x @ w_gx and gh = h @ w_gh are single wide MXU matmuls; the r/z biases
      of both are pre-added into b_gx (the n biases stay split: b_ih_n in b_gx slot,
      b_hh_n in b_gh slot, because n = tanh(i_n + r * h_n)).
    - fc2 is packed two ways: w2s = [I_H | W2_pad] (H, slab_w) produces the lane-dense
      [h | q] slab for the single-step kernel directly from one matmul; w2q = W2 padded
      to q_w = round_up(A,128) lanes for the rollout (no per-step h writeback).
    - Matmul operand weights optionally cast to bf16; biases stay f32.
    """
    H = params["w_hh"].shape[0]
    A = params["w2"].shape[1]
    IN = params["w1"].shape[0]
    wdt = jnp.bfloat16 if use_bf16_matmul else jnp.float32

    G = _round_up(3 * H, 128)
    slab_w = _round_up(H + A, 128)
    q_w = _round_up(A, 128)

    w_ih, w_hh = params["w_ih"], params["w_hh"]
    b_ih, b_hh = params["b_ih"], params["b_hh"]

    w_gx = jnp.zeros((H, G), jnp.float32).at[:, :3 * H].set(w_ih)
    b_gx = (jnp.zeros((1, G), jnp.float32)
            .at[:, :2 * H].set(b_ih[:, :2 * H] + b_hh[:, :2 * H])
            .at[:, 2 * H:3 * H].set(b_ih[:, 2 * H:]))
    w_gh = jnp.zeros((H, G), jnp.float32).at[:, :3 * H].set(w_hh)
    b_gh = jnp.zeros((1, G), jnp.float32).at[:, 2 * H:3 * H].set(b_hh[:, 2 * H:])

    eye = jnp.eye(H, dtype=jnp.float32)
    w2s = (jnp.zeros((H, slab_w), jnp.float32)
           .at[:, :H].set(eye).at[:, H:H + A].set(params["w2"]))
    b2s = jnp.zeros((1, slab_w), jnp.float32).at[:, H:H + A].set(params["b2"])
    w2q = jnp.zeros((H, q_w), jnp.float32).at[:, :A].set(params["w2"])
    b2q = jnp.zeros((1, q_w), jnp.float32).at[:, :A].set(params["b2"])

    return {
        "H": H, "A": A, "IN": IN, "G": G, "slab_w": slab_w, "q_w": q_w,
        "w1": params["w1"].astype(wdt), "b1": params["b1"].astype(jnp.float32),
        "w_gx": w_gx.astype(wdt), "b_gx": b_gx,
        "w_gh": w_gh.astype(wdt), "b_gh": b_gh,
        "w2s": w2s.astype(wdt), "b2s": b2s,
        "w2q": w2q.astype(wdt), "b2q": b2q,
    }


# ---------------------------------------------------------------------------
# kernel math
# ---------------------------------------------------------------------------
def _sigmoid(x):
    # sigmoid(x) = 0.5 * tanh(0.5 x) + 0.5 : one EUP push instead of exp + reciprocal.
    return 0.5 * jnp.tanh(0.5 * x) + 0.5


def _gx_from_obs(obs_ref, w1_ref, b1_ref, wgx_ref, bgx_ref):
    """fc1 -> ReLU -> x @ [Wih_r|Wih_z|Wih_n]  (all x-dependent work)."""
    cdt = w1_ref.dtype
    x = jnp.dot(obs_ref[...].astype(cdt), w1_ref[...],
                preferred_element_type=jnp.float32) + b1_ref[...]
    x = jnp.maximum(x, 0.0)
    return jnp.dot(x.astype(cdt), wgx_ref[...],
                   preferred_element_type=jnp.float32) + bgx_ref[...]


def _gru_core(gx, h_in, wgh_ref, bgh_ref, H):
    """h-dependent recurrence: gh matmul + gates (all elementwise math in f32)."""
    cdt = wgh_ref.dtype
    gh = jnp.dot(h_in.astype(cdt), wgh_ref[...],
                 preferred_element_type=jnp.float32) + bgh_ref[...]
    rz = _sigmoid(gx[:, :2 * H] + gh[:, :2 * H])
    r = rz[:, :H]
    z = rz[:, H:2 * H]
    n = jnp.tanh(gx[:, 2 * H:3 * H] + r * gh[:, 2 * H:3 * H])
    return (1.0 - z) * n + z * h_in


# ---------------------------------------------------------------------------
# kernels
# ---------------------------------------------------------------------------
def rnn_step_kernel(obs_ref, h_ref, w1_ref, b1_ref, wgx_ref, bgx_ref,
                    wgh_ref, bgh_ref, w2s_ref, b2s_ref, out_ref, *, H):
    gx = _gx_from_obs(obs_ref, w1_ref, b1_ref, wgx_ref, bgx_ref)
    h_in = h_ref[...].astype(jnp.float32)
    h_new = _gru_core(gx, h_in, wgh_ref, bgh_ref, H)
    # slab = h_new @ [I_H | W2_pad] + [0 | b2_pad]  -> lane-dense [h | q] store, no concat
    cdt = w2s_ref.dtype
    slab = jnp.dot(h_new.astype(cdt), w2s_ref[...],
                   preferred_element_type=jnp.float32) + b2s_ref[...]
    out_ref[...] = slab.astype(out_ref.dtype)


def rnn_gx_kernel(obs_ref, w1_ref, b1_ref, wgx_ref, bgx_ref, gx_ref):
    """Rollout phase 1: time-parallel fc1+ReLU + gx over all T*B rows."""
    gx = _gx_from_obs(obs_ref, w1_ref, b1_ref, wgx_ref, bgx_ref)
    gx_ref[...] = gx.astype(gx_ref.dtype)


def rnn_seq_kernel(gx_ref, h0_ref, wgh_ref, bgh_ref, w2q_ref, b2q_ref,
                   q_ref, hfin_ref, *, H):
    """Rollout phase 2: sequential recurrence.  The hidden state is carried in the
    resident h_final output block (constant index over t) -> no per-step h writeback."""
    @pl.when(pl.program_id(1) == 0)
    def _():
        hfin_ref[...] = h0_ref[...]

    h_in = hfin_ref[...]
    gx = gx_ref[...].astype(jnp.float32)
    h_new = _gru_core(gx, h_in, wgh_ref, bgh_ref, H)
    hfin_ref[...] = h_new

    cdt = w2q_ref.dtype
    q = jnp.dot(h_new.astype(cdt), w2q_ref[...],
                preferred_element_type=jnp.float32) + b2q_ref[...]
    q_ref[...] = q.astype(q_ref.dtype)


# ---------------------------------------------------------------------------
# wrappers
# ---------------------------------------------------------------------------
def rnn_forward(obs, hidden_state, packed, *, batch_tile=512, out_dtype=None):
    """Single step: obs (B, input_dim), hidden_state reshapeable to (-1, H).
    `packed` = pack_params(params, ...) computed once.  Returns (q, h)."""
    H, A, IN, G, slab_w = (packed["H"], packed["A"], packed["IN"],
                           packed["G"], packed["slab_w"])
    bf16 = packed["w1"].dtype == jnp.bfloat16
    if out_dtype is None:
        out_dtype = jnp.bfloat16 if bf16 else jnp.float32

    obs = obs.astype(jnp.float32)
    h_in = hidden_state.reshape(-1, H).astype(jnp.float32)
    B = obs.shape[0]

    nb, TB, B_pad = _choose_batch_tiles(B, batch_tile)
    if B_pad != B:
        obs = jnp.pad(obs, ((0, B_pad - B), (0, 0)))
        h_in = jnp.pad(h_in, ((0, B_pad - B), (0, 0)))

    wl = [packed[k] for k in ("w1", "b1", "w_gx", "b_gx", "w_gh", "b_gh", "w2s", "b2s")]
    flops = 2 * B_pad * (IN * H + 2 * H * G + H * slab_w)
    trans = B_pad * 3 * H
    w_bytes = sum(int(v.size) * v.dtype.itemsize for v in wl)
    bytes_accessed = int(w_bytes + obs.size * 4 + h_in.size * 4
                         + B_pad * slab_w * jnp.dtype(out_dtype).itemsize)

    const = lambda b: (0, 0)
    slab = pl.pallas_call(
        functools.partial(rnn_step_kernel, H=H),
        out_shape=jax.ShapeDtypeStruct((B_pad, slab_w), out_dtype),
        grid=(nb,),
        in_specs=[
            pl.BlockSpec((TB, IN), lambda b: (b, 0)),
            pl.BlockSpec((TB, H), lambda b: (b, 0)),
        ] + [pl.BlockSpec(v.shape, const) for v in wl],
        out_specs=pl.BlockSpec((TB, slab_w), lambda b: (b, 0)),
        compiler_params=pltpu.CompilerParams(dimension_semantics=("parallel",)),
        cost_estimate=pl.CostEstimate(flops=flops, transcendentals=trans,
                                      bytes_accessed=bytes_accessed),
    )(obs, h_in, *wl)

    h_new = slab[:B, :H]
    q = slab[:B, H:H + A]
    return q, h_new


def rnn_rollout(obs_seq, hidden_state, packed, *, batch_tile=512, out_dtype=None):
    """Fused T-step rollout: obs_seq (T, B, input_dim), initial hidden (B, H).
    Phase 1 (parallel over T*B): fc1+ReLU and gx.  Phase 2 (sequential over T):
    recurrent matmul + gates + fc2, weights resident, h carried in the output block.
    Returns (q_seq (T,B,A), h_final (B,H))."""
    H, A, IN, G, q_w = (packed["H"], packed["A"], packed["IN"],
                        packed["G"], packed["q_w"])
    bf16 = packed["w1"].dtype == jnp.bfloat16
    if out_dtype is None:
        out_dtype = jnp.bfloat16 if bf16 else jnp.float32
    gx_dtype = jnp.bfloat16 if bf16 else jnp.float32
    # TODO(synk): for very long T with bf16 weights, recurrent bf16 operand error
    # compounds slightly per step; use pack_params(use_bf16_matmul=False) if exactness matters.

    obs_seq = obs_seq.astype(jnp.float32)
    T, B, _ = obs_seq.shape
    h0 = hidden_state.reshape(-1, H).astype(jnp.float32)

    nb, TB, B_pad = _choose_batch_tiles(B, batch_tile)
    if B_pad != B:
        obs_seq = jnp.pad(obs_seq, ((0, 0), (0, B_pad - B), (0, 0)))
        h0 = jnp.pad(h0, ((0, B_pad - B), (0, 0)))

    # ---- phase 1: all x-dependent work, batched over T (one big MXU-friendly pass)
    obs_flat = obs_seq.reshape(T * B_pad, IN)
    wl1 = [packed[k] for k in ("w1", "b1", "w_gx", "b_gx")]
    const1 = lambda i: (0, 0)
    flops1 = 2 * T * B_pad * (IN * H + H * G)
    bytes1 = int(sum(int(v.size) * v.dtype.itemsize for v in wl1) + obs_flat.size * 4
                 + T * B_pad * G * jnp.dtype(gx_dtype).itemsize)
    gx_flat = pl.pallas_call(
        rnn_gx_kernel,
        out_shape=jax.ShapeDtypeStruct((T * B_pad, G), gx_dtype),
        grid=(T * nb,),
        in_specs=[pl.BlockSpec((TB, IN), lambda i: (i, 0))]
                 + [pl.BlockSpec(v.shape, const1) for v in wl1],
        out_specs=pl.BlockSpec((TB, G), lambda i: (i, 0)),
        compiler_params=pltpu.CompilerParams(dimension_semantics=("parallel",)),
        cost_estimate=pl.CostEstimate(flops=flops1, transcendentals=0,
                                      bytes_accessed=bytes1),
    )(obs_flat, *wl1)
    gx_seq = gx_flat.reshape(T, B_pad, G)

    # ---- phase 2: sequential recurrence (only h-dependent work per step)
    wl2 = [packed[k] for k in ("w_gh", "b_gh", "w2q", "b2q")]
    const2 = lambda b, t: (0, 0)
    flops2 = 2 * T * B_pad * (H * G + H * q_w)
    trans2 = T * B_pad * 3 * H
    bytes2 = int(sum(int(v.size) * v.dtype.itemsize for v in wl2)
                 + gx_seq.size * jnp.dtype(gx_dtype).itemsize + h0.size * 4
                 + T * B_pad * q_w * jnp.dtype(out_dtype).itemsize + B_pad * H * 4)
    q_seq, h_fin = pl.pallas_call(
        functools.partial(rnn_seq_kernel, H=H),
        out_shape=(jax.ShapeDtypeStruct((T, B_pad, q_w), out_dtype),
                   jax.ShapeDtypeStruct((B_pad, H), jnp.float32)),
        grid=(nb, T),
        in_specs=[
            pl.BlockSpec((None, TB, G), lambda b, t: (t, b, 0)),
            pl.BlockSpec((TB, H), lambda b, t: (b, 0)),
        ] + [pl.BlockSpec(v.shape, const2) for v in wl2],
        out_specs=(pl.BlockSpec((None, TB, q_w), lambda b, t: (t, b, 0)),
                   pl.BlockSpec((TB, H), lambda b, t: (b, 0))),
        compiler_params=pltpu.CompilerParams(
            dimension_semantics=("parallel", "arbitrary")),
        cost_estimate=pl.CostEstimate(flops=flops2, transcendentals=trans2,
                                      bytes_accessed=bytes2),
    )(gx_seq, h0, *wl2)

    return q_seq[:, :B, :A], h_fin[:B]


# ---------------------------------------------------------------------------
# params + pure-JAX reference (mirrors the PyTorch module)
# ---------------------------------------------------------------------------
def init_params(key, input_dim, hidden_dim, n_actions):
    ks = jax.random.split(key, 8)
    s_in = 1.0 / jnp.sqrt(input_dim)
    s_h = 1.0 / jnp.sqrt(hidden_dim)
    # Weights stored transposed: (in_features, out_features); biases as (1, out).
    return {
        "w1": jax.random.uniform(ks[0], (input_dim, hidden_dim), jnp.float32, -s_in, s_in),
        "b1": jax.random.uniform(ks[1], (1, hidden_dim), jnp.float32, -s_in, s_in),
        "w_ih": jax.random.uniform(ks[2], (hidden_dim, 3 * hidden_dim), jnp.float32, -s_h, s_h),
        "b_ih": jax.random.uniform(ks[3], (1, 3 * hidden_dim), jnp.float32, -s_h, s_h),
        "w_hh": jax.random.uniform(ks[4], (hidden_dim, 3 * hidden_dim), jnp.float32, -s_h, s_h),
        "b_hh": jax.random.uniform(ks[5], (1, 3 * hidden_dim), jnp.float32, -s_h, s_h),
        "w2": jax.random.uniform(ks[6], (hidden_dim, n_actions), jnp.float32, -s_h, s_h),
        "b2": jax.random.uniform(ks[7], (1, n_actions), jnp.float32, -s_h, s_h),
    }


def rnn_forward_ref(obs, hidden_state, params, rnn_hidden_dim):
    H = rnn_hidden_dim
    x = jax.nn.relu(obs @ params["w1"] + params["b1"])
    h_in = hidden_state.reshape(-1, H)
    gi = x @ params["w_ih"] + params["b_ih"]
    gh = h_in @ params["w_hh"] + params["b_hh"]
    r = jax.nn.sigmoid(gi[:, :H] + gh[:, :H])
    z = jax.nn.sigmoid(gi[:, H:2 * H] + gh[:, H:2 * H])
    n = jnp.tanh(gi[:, 2 * H:] + r * gh[:, 2 * H:])
    h = (1.0 - z) * n + z * h_in
    q = h @ params["w2"] + params["b2"]
    return q, h


# ---------------------------------------------------------------------------
# demo / self-test
# ---------------------------------------------------------------------------
if __name__ == "__main__":
    batch = 8
    input_dim = 32        # obs feature dim (input_shape in the torch module)
    rnn_hidden_dim = 64   # args.rnn_hidden_dim
    n_actions = 16        # args.n_actions
    T = 6                 # rollout length for the fused-time-loop path

    key = jax.random.PRNGKey(0)
    k_obs, k_h, k_p, k_seq = jax.random.split(key, 4)

    obs = jax.random.normal(k_obs, (batch, input_dim), jnp.float32)
    hidden_state = jax.random.normal(k_h, (batch, rnn_hidden_dim), jnp.float32)
    params = init_params(k_p, input_dim, rnn_hidden_dim, n_actions)

    packed_f32 = pack_params(params, use_bf16_matmul=False)   # exact path
    packed_bf16 = pack_params(params, use_bf16_matmul=True)   # default fast path

    q_ref, h_ref = rnn_forward_ref(obs, hidden_state, params, rnn_hidden_dim)

    # --- single step, f32 matmuls (exact module semantics) ---
    q, h = rnn_forward(obs, hidden_state, packed_f32)
    q = jax.block_until_ready(q)
    h = jax.block_until_ready(h)
    assert jnp.allclose(q, q_ref, atol=1e-5, rtol=1e-5), "q mismatch (f32)"
    assert jnp.allclose(h, h_ref, atol=1e-5, rtol=1e-5), "h mismatch (f32)"

    # --- single step, bf16 MXU operands (default fast path; f32 gate math) ---
    q_bf, h_bf = rnn_forward(obs, hidden_state, packed_bf16)
    q_bf = jax.block_until_ready(q_bf)
    assert jnp.allclose(q_bf.astype(jnp.float32), q_ref, atol=5e-2, rtol=5e-2), "q mismatch (bf16)"
    assert jnp.allclose(h_bf.astype(jnp.float32), h_ref, atol=5e-2, rtol=5e-2), "h mismatch (bf16)"

    # --- ragged batch (exercises batch padding path) ---
    q5, h5 = rnn_forward(obs[:5], hidden_state[:5], packed_f32)
    q5 = jax.block_until_ready(q5)
    q5_ref, h5_ref = rnn_forward_ref(obs[:5], hidden_state[:5], params, rnn_hidden_dim)
    assert jnp.allclose(q5, q5_ref, atol=1e-5, rtol=1e-5), "q mismatch (ragged)"
    assert jnp.allclose(h5, h5_ref, atol=1e-5, rtol=1e-5), "h mismatch (ragged)"

    # --- fused T-step rollout (hoisted gx + sequential recurrence) ---
    obs_seq = jax.random.normal(k_seq, (T, batch, input_dim), jnp.float32)
    h_c = hidden_state
    q_steps = []
    for t in range(T):
        q_t, h_c = rnn_forward_ref(obs_seq[t], h_c, params, rnn_hidden_dim)
        q_steps.append(q_t)
    q_seq_ref = jnp.stack(q_steps)

    q_seq, h_T = rnn_rollout(obs_seq, hidden_state, packed_f32)
    q_seq = jax.block_until_ready(q_seq)
    assert jnp.allclose(q_seq, q_seq_ref, atol=1e-4, rtol=1e-4), "q_seq mismatch (f32)"
    assert jnp.allclose(h_T, h_c, atol=1e-4, rtol=1e-4), "h_final mismatch (f32)"

    q_seq_bf, h_T_bf = rnn_rollout(obs_seq, hidden_state, packed_bf16)
    q_seq_bf = jax.block_until_ready(q_seq_bf)
    assert jnp.allclose(q_seq_bf.astype(jnp.float32), q_seq_ref, atol=5e-2, rtol=5e-2), \
        "q_seq mismatch (bf16)"
    assert jnp.allclose(h_T_bf, h_c, atol=5e-2, rtol=5e-2), "h_final mismatch (bf16)"

    print("KERNEL_OK")
</pallas_src>

<mosaic_0001>
module attributes {stable_mosaic.version = 11 : i64} {
  func.func @rnn_step_kernel(%arg0: i32, %arg1: memref<8x32xf32, #tpu.memory_space<vmem>>, %arg2: memref<8x64xf32, #tpu.memory_space<vmem>>, %arg3: memref<32x64xf32, #tpu.memory_space<vmem>>, %arg4: memref<1x64xf32, #tpu.memory_space<vmem>>, %arg5: memref<64x256xf32, #tpu.memory_space<vmem>>, %arg6: memref<1x256xf32, #tpu.memory_space<vmem>>, %arg7: memref<64x256xf32, #tpu.memory_space<vmem>>, %arg8: memref<1x256xf32, #tpu.memory_space<vmem>>, %arg9: memref<64x128xf32, #tpu.memory_space<vmem>>, %arg10: memref<1x128xf32, #tpu.memory_space<vmem>>, %arg11: memref<8x128xf32, #tpu.memory_space<vmem>>) attributes {dimension_semantics = [#tpu.dimension_semantics<parallel>], iteration_bounds = array<i64: 1>, scalar_prefetch = 0 : i64, scratch_operands = 0 : i64, tpu.core_type = #tpu.core_type<tc>, window_params = [{transform_indices = @transform_0, window_bounds = array<i64: 8, 32>}, {transform_indices = @transform_1, window_bounds = array<i64: 8, 64>}, {pipeline_mode = #tpu.pipeline_mode<synchronous>, transform_indices = @transform_2, window_bounds = array<i64: 32, 64>}, {pipeline_mode = #tpu.pipeline_mode<synchronous>, transform_indices = @transform_3, window_bounds = array<i64: 1, 64>}, {pipeline_mode = #tpu.pipeline_mode<synchronous>, transform_indices = @transform_4, window_bounds = array<i64: 64, 256>}, {pipeline_mode = #tpu.pipeline_mode<synchronous>, transform_indices = @transform_5, window_bounds = array<i64: 1, 256>}, {pipeline_mode = #tpu.pipeline_mode<synchronous>, transform_indices = @transform_6, window_bounds = array<i64: 64, 256>}, {pipeline_mode = #tpu.pipeline_mode<synchronous>, transform_indices = @transform_7, window_bounds = array<i64: 1, 256>}, {pipeline_mode = #tpu.pipeline_mode<synchronous>, transform_indices = @transform_8, window_bounds = array<i64: 64, 128>}, {pipeline_mode = #tpu.pipeline_mode<synchronous>, transform_indices = @transform_9, window_bounds = array<i64: 1, 128>}, {transform_indices = @transform_10, window_bounds = array<i64: 8, 128>}]} {
    %c0 = arith.constant 0 : index
    %c0_0 = arith.constant 0 : index
    %0 = vector.load %arg1[%c0, %c0_0] : memref<8x32xf32, #tpu.memory_space<vmem>>, vector<8x32xf32>
    %c0_1 = arith.constant 0 : index
    %c0_2 = arith.constant 0 : index
    %1 = vector.load %arg3[%c0_1, %c0_2] : memref<32x64xf32, #tpu.memory_space<vmem>>, vector<32x64xf32>
    %cst = arith.constant dense<0.000000e+00> : vector<8x64xf32>
    %2 = tpu.matmul %0, %1, %cst {dimension_numbers = #tpu.dot_dimension_numbers<[1], [0], [0], [1], [0, 0, 1, 1], [], []>} : vector<8x32xf32>, vector<32x64xf32>, vector<8x64xf32> -> vector<8x64xf32>
    %c0_3 = arith.constant 0 : index
    %c0_4 = arith.constant 0 : index
    %3 = vector.load %arg4[%c0_3, %c0_4] : memref<1x64xf32, #tpu.memory_space<vmem>>, vector<1x64xf32>
    %4 = vector.broadcast %3 : vector<1x64xf32> to vector<8x64xf32>
    %5 = arith.addf %2, %4 : vector<8x64xf32>
    %cst_5 = arith.constant 0.000000e+00 : f32
    %6 = vector.broadcast %cst_5 : f32 to vector<8x64xf32>
    %7 = arith.maximumf %5, %6 : vector<8x64xf32>
    %c0_6 = arith.constant 0 : index
    %c0_7 = arith.constant 0 : index
    %8 = vector.load %arg5[%c0_6, %c0_7] : memref<64x256xf32, #tpu.memory_space<vmem>>, vector<64x256xf32>
    %cst_8 = arith.constant dense<0.000000e+00> : vector<8x256xf32>
    %9 = tpu.matmul %7, %8, %cst_8 {dimension_numbers = #tpu.dot_dimension_numbers<[1], [0], [0], [1], [0, 0, 1, 1], [], []>} : vector<8x64xf32>, vector<64x256xf32>, vector<8x256xf32> -> vector<8x256xf32>
    %c0_9 = arith.constant 0 : index
    %c0_10 = arith.constant 0 : index
    %10 = vector.load %arg6[%c0_9, %c0_10] : memref<1x256xf32, #tpu.memory_space<vmem>>, vector<1x256xf32>
    %11 = vector.broadcast %10 : vector<1x256xf32> to vector<8x256xf32>
    %12 = arith.addf %9, %11 : vector<8x256xf32>
    %c0_11 = arith.constant 0 : index
    %c0_12 = arith.constant 0 : index
    %13 = vector.load %arg2[%c0_11, %c0_12] : memref<8x64xf32, #tpu.memory_space<vmem>>, vector<8x64xf32>
    %c0_13 = arith.constant 0 : index
    %c0_14 = arith.constant 0 : index
    %14 = vector.load %arg7[%c0_13, %c0_14] : memref<64x256xf32, #tpu.memory_space<vmem>>, vector<64x256xf32>
    %cst_15 = arith.constant dense<0.000000e+00> : vector<8x256xf32>
    %15 = tpu.matmul %13, %14, %cst_15 {dimension_numbers = #tpu.dot_dimension_numbers<[1], [0], [0], [1], [0, 0, 1, 1], [], []>} : vector<8x64xf32>, vector<64x256xf32>, vector<8x256xf32> -> vector<8x256xf32>
    %c0_16 = arith.constant 0 : index
    %c0_17 = arith.constant 0 : index
    %16 = vector.load %arg8[%c0_16, %c0_17] : memref<1x256xf32, #tpu.memory_space<vmem>>, vector<1x256xf32>
    %17 = vector.broadcast %16 : vector<1x256xf32> to vector<8x256xf32>
    %18 = arith.addf %15, %17 : vector<8x256xf32>
    %19 = vector.extract_strided_slice %12 {offsets = [0, 0], sizes = [8, 128], strides = [1, 1]} : vector<8x256xf32> to vector<8x128xf32>
    %20 = vector.extract_strided_slice %18 {offsets = [0, 0], sizes = [8, 128], strides = [1, 1]} : vector<8x256xf32> to vector<8x128xf32>
    %21 = arith.addf %19, %20 : vector<8x128xf32>
    %cst_18 = arith.constant 5.000000e-01 : f32
    %22 = vector.broadcast %cst_18 : f32 to vector<8x128xf32>
    %23 = arith.mulf %22, %21 : vector<8x128xf32>
    %24 = math.tanh %23 : vector<8x128xf32>
    %cst_19 = arith.constant 5.000000e-01 : f32
    %25 = vector.broadcast %cst_19 : f32 to vector<8x128xf32>
    %26 = arith.mulf %25, %24 : vector<8x128xf32>
    %cst_20 = arith.constant 5.000000e-01 : f32
    %27 = vector.broadcast %cst_20 : f32 to vector<8x128xf32>
    %28 = arith.addf %26, %27 : vector<8x128xf32>
    %29 = vector.extract_strided_slice %28 {offsets = [0, 0], sizes = [8, 64], strides = [1, 1]} : vector<8x128xf32> to vector<8x64xf32>
    %30 = vector.extract_strided_slice %28 {offsets = [0, 64], sizes = [8, 64], strides = [1, 1]} : vector<8x128xf32> to vector<8x64xf32>
    %31 = vector.extract_strided_slice %12 {offsets = [0, 128], sizes = [8, 64], strides = [1, 1]} : vector<8x256xf32> to vector<8x64xf32>
    %32 = vector.extract_strided_slice %18 {offsets = [0, 128], sizes = [8, 64], strides = [1, 1]} : vector<8x256xf32> to vector<8x64xf32>
    %33 = arith.mulf %29, %32 : vector<8x64xf32>
    %34 = arith.addf %31, %33 : vector<8x64xf32>
    %35 = math.tanh %34 : vector<8x64xf32>
    %cst_21 = arith.constant 1.000000e+00 : f32
    %36 = vector.broadcast %cst_21 : f32 to vector<8x64xf32>
    %37 = arith.subf %36, %30 : vector<8x64xf32>
    %38 = arith.mulf %37, %35 : vector<8x64xf32>
    %39 = arith.mulf %30, %13 : vector<8x64xf32>
    %40 = arith.addf %38, %39 : vector<8x64xf32>
    %c0_22 = arith.constant 0 : index
    %c0_23 = arith.constant 0 : index
    %41 = vector.load %arg9[%c0_22, %c0_23] : memref<64x128xf32, #tpu.memory_space<vmem>>, vector<64x128xf32>
    %cst_24 = arith.constant dense<0.000000e+00> : vector<8x128xf32>
    %42 = tpu.matmul %40, %41, %cst_24 {dimension_numbers = #tpu.dot_dimension_numbers<[1], [0], [0], [1], [0, 0, 1, 1], [], []>} : vector<8x64xf32>, vector<64x128xf32>, vector<8x128xf32> -> vector<8x128xf32>
    %c0_25 = arith.constant 0 : index
    %c0_26 = arith.constant 0 : index
    %43 = vector.load %arg10[%c0_25, %c0_26] : memref<1x128xf32, #tpu.memory_space<vmem>>, vector<1x128xf32>
    %44 = vector.broadcast %43 : vector<1x128xf32> to vector<8x128xf32>
    %45 = arith.addf %42, %44 : vector<8x128xf32>
    %c0_27 = arith.constant 0 : index
    %c0_28 = arith.constant 0 : index
    %46 = vector.load %arg11[%c0_27, %c0_28] : memref<8x128xf32, #tpu.memory_space<vmem>>, vector<8x128xf32>
    tpu.vector_store %arg11[%c0_27, %c0_28], %45 {strides = array<i32>} : memref<8x128xf32, #tpu.memory_space<vmem>>, vector<8x128xf32>,
    return
  }
  func.func @transform_0(%arg0: i32) -> (i32, i32) {
    %c0_i32 = arith.constant 0 : i32
    %c0_i32_0 = arith.constant 0 : i32
    return %arg0, %c0_i32 : i32, i32
  }
  func.func @transform_1(%arg0: i32) -> (i32, i32) {
    %c0_i32 = arith.constant 0 : i32
    %c0_i32_0 = arith.constant 0 : i32
    return %arg0, %c0_i32 : i32, i32
  }
  func.func @transform_2(%arg0: i32) -> (i32, i32) {
    %c0_i32 = arith.constant 0 : i32
    %c0_i32_0 = arith.constant 0 : i32
    %c0_i32_1 = arith.constant 0 : i32
    return %c0_i32, %c0_i32_0 : i32, i32
  }
  func.func @transform_3(%arg0: i32) -> (i32, i32) {
    %c0_i32 = arith.constant 0 : i32
    %c0_i32_0 = arith.constant 0 : i32
    %c0_i32_1 = arith.constant 0 : i32
    return %c0_i32, %c0_i32_0 : i32, i32
  }
  func.func @transform_4(%arg0: i32) -> (i32, i32) {
    %c0_i32 = arith.constant 0 : i32
    %c0_i32_0 = arith.constant 0 : i32
    %c0_i32_1 = arith.constant 0 : i32
    return %c0_i32, %c0_i32_0 : i32, i32
  }
  func.func @transform_5(%arg0: i32) -> (i32, i32) {
    %c0_i32 = arith.constant 0 : i32
    %c0_i32_0 = arith.constant 0 : i32
    %c0_i32_1 = arith.constant 0 : i32
    return %c0_i32, %c0_i32_0 : i32, i32
  }
  func.func @transform_6(%arg0: i32) -> (i32, i32) {
    %c0_i32 = arith.constant 0 : i32
    %c0_i32_0 = arith.constant 0 : i32
    %c0_i32_1 = arith.constant 0 : i32
    return %c0_i32, %c0_i32_0 : i32, i32
  }
  func.func @transform_7(%arg0: i32) -> (i32, i32) {
    %c0_i32 = arith.constant 0 : i32
    %c0_i32_0 = arith.constant 0 : i32
    %c0_i32_1 = arith.constant 0 : i32
    return %c0_i32, %c0_i32_0 : i32, i32
  }
  func.func @transform_8(%arg0: i32) -> (i32, i32) {
    %c0_i32 = arith.constant 0 : i32
    %c0_i32_0 = arith.constant 0 : i32
    %c0_i32_1 = arith.constant 0 : i32
    return %c0_i32, %c0_i32_0 : i32, i32
  }
  func.func @transform_9(%arg0: i32) -> (i32, i32) {
    %c0_i32 = arith.constant 0 : i32
    %c0_i32_0 = arith.constant 0 : i32
    %c0_i32_1 = arith.constant 0 : i32
    return %c0_i32, %c0_i32_0 : i32, i32
  }
  func.func @transform_10(%arg0: i32) -> (i32, i32) {
    %c0_i32 = arith.constant 0 : i32
    %c0_i32_0 = arith.constant 0 : i32
    return %arg0, %c0_i32 : i32, i32
  }
}

</mosaic_0001>

<bundles_post_ra>
// kernel: tpu_custom_call.1
= control target key start
LH: loop header
LB: loop body
LE: loop exit
PB: predicated region body
PF: predicated region fallthrough
CT: control target
= control target key end

     0   :  { %15 = vsyncpa [#allocation3], 0  ;;  %s882_s0 = inlined_call_operand.hbm [shape: f32[8,32], index: 0, kind: input, shape index: {}]   ;;  %s883_s1 = inlined_call_operand.hbm [shape: f32[8,64], index: 1, kind: input, shape index: {}]   ;;  %s884_s2 = inlined_call_operand.hbm [shape: f32[32,64], index: 2, kind: input, shape index: {}]   ;;  %s885_s3 = inlined_call_operand.vmem [shape: f32[1,64], index: 3, kind: input, shape index: {}]   ;;  %s886_s4 = inlined_call_operand.hbm [shape: f32[64,256], index: 4, kind: input, shape index: {}]   ;;  %s887_s5 = inlined_call_operand.vmem [shape: f32[1,256], index: 5, kind: input, shape index: {}]   ;;  %s888_s6 = inlined_call_operand.hbm [shape: f32[64,256], index: 6, kind: input, shape index: {}]   ;;  %s889_s7 = inlined_call_operand.vmem [shape: f32[1,256], index: 7, kind: input, shape index: {}]   ;;  %s890_s8 = inlined_call_operand.hbm [shape: f32[64,128], index: 8, kind: input, shape index: {}]   ;;  %s891_s9 = inlined_call_operand.vmem [shape: f32[1,128], index: 9, kind: input, shape index: {}]   ;;  %s892_s10 = inlined_call_operand.hbm [shape: f32[8,128], index: 10, kind: output, shape index: {}]  }
   0x1   :  { %16 = vsyncpa [#allocation6], 0 }
   0x2   :  { %17 = vsyncpa [#allocation9], 0 }
   0x3   :  { %18 = vsyncpa [#allocation12], 0 }
   0x4   :  { %19 = vsyncpa [#allocation4], 0  ;;  %s753_s13 = smov [#allocation5]   ;;  %s754_s15 = smov [#allocation8]  }
   0x5   :  { %s36_s14 = sshll.u32 %s753_s13, 4  ;;  %s59_s16 = sshll.u32 %s754_s15, 4  ;;  %s37_s14 = int_to_ptr.vmem [resolvable:$true] %s36_s14  ;;  %s60_s16 = int_to_ptr.vmem [resolvable:$true] %s59_s16 }
   0x6   :  { %s611_s17 = scalar_lea.vmem %s37_s14, 128  ;;  %p616_p1 = scmp.lt.s32.totalorder %s37_s14, %s37_s14 }
   0x7   :  { %p612_p0 = scmp.ne.s32.totalorder %s37_s14, %s611_s17  ;;  %p617_p2 = scmp.lt.s32.totalorder %s611_s17, %s611_s17 }
   0x9   :  { %p618_p3 = por %p617_p2, %p616_p1 }
   0xb   :  { %p619_p4 = pnand %p618_p3, %p612_p0 }
   0xd   :  { %622 = shalt.err (!%p619_p4)
}
   0xe   :  { %39 = dma.hbm_to_vmem [thread:$0]  %s883_s1, 128, %s37_s14, [#allocation6]  }
   0xf   :  { %s631_s20 = scalar_lea.vmem %s60_s16, 2048  ;;  %p636_p6 = scmp.lt.s32.totalorder %s60_s16, %s60_s16 }
  0x10   :  { %p632_p5 = scmp.ne.s32.totalorder %s60_s16, %s631_s20  ;;  %p637_p7 = scmp.lt.s32.totalorder %s631_s20, %s631_s20 }
  0x12   :  { %p638_p8 = por %p637_p7, %p636_p6 }
  0x14   :  { %p639_p9 = pnand %p638_p8, %p632_p5 }
  0x16   :  { %642 = shalt.err (!%p639_p9)
}
  0x17   :  { %s755_s21 = smov 256   ;;  %s756_s22 = smov 16  }
  0x18   :  { %65 = dma.hbm_to_vmem [thread:$0]  %s886_s4, 2048, %s60_s16, [#allocation9], %s755_s21, %s755_s21, %s756_s22  }
  0x19   :  { %s757_s25 = smov [#allocation2]   ;;  %s758_s27 = smov [#allocation7]  }
  0x1a   :  { %s26_s26 = sshll.u32 %s757_s25, 4  ;;  %s45_s1 = sshll.u32 %s758_s27, 4  ;;  %s27_s26 = int_to_ptr.vmem [resolvable:$true] %s26_s26  ;;  %s46_s1 = int_to_ptr.vmem [resolvable:$true] %s45_s1 }
  0x1b   :  { %s651_s28 = scalar_lea.vmem %s27_s26, 128  ;;  %p656_p11 = scmp.lt.s32.totalorder %s27_s26, %s27_s26 }
  0x1c   :  { %p652_p10 = scmp.ne.s32.totalorder %s27_s26, %s651_s28  ;;  %p657_p12 = scmp.lt.s32.totalorder %s651_s28, %s651_s28 }
  0x1e   :  { %p658_p13 = por %p657_p12, %p656_p11 }
  0x20   :  { %p659_p0 = pnand %p658_p13, %p652_p10 }
  0x22   :  { %662 = shalt.err (!%p659_p0)
}
  0x23   :  { %29 = dma.hbm_to_vmem [thread:$0]  %s882_s0, 128, %s27_s26, [#allocation3]  }
  0x24   :  { %s671_s11 = scalar_lea.vmem %s46_s1, 512  ;;  %p676_p2 = scmp.lt.s32.totalorder %s46_s1, %s46_s1 }
  0x25   :  { %p672_p1 = scmp.ne.s32.totalorder %s46_s1, %s671_s11  ;;  %p677_p3 = scmp.lt.s32.totalorder %s671_s11, %s671_s11 }
  0x27   :  { %p678_p4 = por %p677_p3, %p676_p2 }
  0x29   :  { %p679_p5 = pnand %p678_p4, %p672_p1 }
  0x2b   :  { %682 = shalt.err (!%p679_p5)
}
  0x2c   :  { %s759_s4 = smov 128   ;;  %s760_s12 = smov 8  }
  0x2d   :  { %51 = dma.hbm_to_vmem [thread:$0]  %s884_s2, 512, %s46_s1, [#allocation6], %s759_s4, %s759_s4, %s760_s12  }
  0x2e   :  { %s761_s15 = smov [#allocation10]   ;;  %s762_s17 = smov [#allocation11]  }
  0x2f   :  { %s73_s16 = sshll.u32 %s761_s15, 4  ;;  %s87_s18 = sshll.u32 %s762_s17, 4  ;;  %s74_s16 = int_to_ptr.vmem [resolvable:$true] %s73_s16  ;;  %s88_s18 = int_to_ptr.vmem [resolvable:$true] %s87_s18 }
  0x30   :  { %s691_s0 = scalar_lea.vmem %s74_s16, 2048  ;;  %p696_p7 = scmp.lt.s32.totalorder %s74_s16, %s74_s16 }
  0x31   :  { %p692_p6 = scmp.ne.s32.totalorder %s74_s16, %s691_s0  ;;  %p697_p8 = scmp.lt.s32.totalorder %s691_s0, %s691_s0 }
  0x33   :  { %p698_p9 = por %p697_p8, %p696_p7 }
  0x35   :  { %p699_p10 = pnand %p698_p9, %p692_p6 }
  0x37   :  { %702 = shalt.err (!%p699_p10)
}
  0x38   :  { %79 = dma.hbm_to_vmem [thread:$0]  %s888_s6, 2048, %s74_s16, [#allocation9], %s755_s21, %s755_s21, %s756_s22  }
  0x39   :  { %s711_s2 = scalar_lea.vmem %s88_s18, 1024  ;;  %p716_p12 = scmp.lt.s32.totalorder %s88_s18, %s88_s18 }
  0x3a   :  { %p712_p11 = scmp.ne.s32.totalorder %s88_s18, %s711_s2  ;;  %p717_p13 = scmp.lt.s32.totalorder %s711_s2, %s711_s2 }
  0x3c   :  { %p718_p0 = por %p717_p13, %p716_p12 }
  0x3e   :  { %p719_p1 = pnand %p718_p0, %p712_p11 }
  0x40   :  { %722 = shalt.err (!%p719_p1)
}
  0x41   :  { %93 = dma.hbm_to_vmem [thread:$0]  %s890_s8, 1024, %s88_s18, [#allocation12], %s759_s4, %s759_s4, %s760_s12  }
  0x42   :  { %743 = dma.done.wait [#allocation3], 128  }
  0x43   :  { %744 = vsyncadd [#allocation3], 4294967168 }
  0x44   :  { %745 = dma.done.wait [#allocation6], 640  }
  0x45   :  { %746 = vsyncadd [#allocation6], 4294966656 }
  0x46   :  { %747 = dma.done.wait [#allocation9], 4096  }
  0x47   :  { %748 = vsyncadd [#allocation9], 4294963200 }
  0x48   :  { %749 = dma.done.wait [#allocation12], 1024  }
  0x49   :  { %750 = vsyncadd [#allocation12], 4294966272  ;;  %v763_v0 = vmov 0.0   ;;  %vm764_vm0 = vmmov 0   ;;  %v118_v1 = vld [vmem:[#allocation7 + $0x18] sm:$0xff]  ;;  %v117_v2 = vld [vmem:[#allocation7 + $0x10] sm:$0xff]  ;;  %v219_v44 = vlaneseq }
  0x4a   :  { %555 = vmatprep.subr.mxu0 %v763_v0  ;;  %563 = vmatprep.mubr.msk.f32.mxu0 %vm764_vm0, %v763_v0  ;;  %v116_v3 = vld [vmem:[#allocation7 + $0x8] sm:$0xff]  ;;  %v216_v4 = vld [vmem:[#allocation8 + $0x78] sm:$0xff]  ;;  %v215_v5 = vld [vmem:[#allocation8 + $0x70] sm:$0xff]  ;;  %vm126_vm1 = vcmask 261120   ;;  %vm229_vm2 = vcmask 523264   ;;  %s766_s27 = smov [#allocation13]  }
  0x4b   :  { %297 = vmatprep.mubr.f32.mxu1 %v763_v0  ;;  %556 = vmatpush3.msra.mxu0 %v118_v1  ;;  %v214_v6 = vld [vmem:[#allocation8 + $0x68] sm:$0xff]  ;;  %v115_v7 = vld [vmem:[#allocation7] sm:$0xff]  ;;  %v114_v9 = vld [vmem:[#allocation2] sm:$0xff]  ;;  %v220_v45 = vshrl.u32 %v219_v44, 7  ;;  %s523_s1 = sshll.u32 %s766_s27, 4  ;;  %s524_s1 = int_to_ptr.vmem [resolvable:$true] %s523_s1 }
  0x4c   :  { %557 = vmatprep.subr.mxu0 %v763_v0  ;;  %249 = vmatprep.subr.mxu1 %v216_v4  ;;  %v213_v8 = vld [vmem:[#allocation8 + $0x60] sm:$0xff]  ;;  %v320_v10 = vld [vmem:[#allocation10 + $0x78] sm:$0xff]  ;;  %v319_v12 = vld [vmem:[#allocation10 + $0x70] sm:$0xff]  ;;  %s723_s28 = scalar_lea.vmem %s524_s1, 128  ;;  %p728_p3 = scmp.lt.s32.totalorder %s524_s1, %s524_s1 }
  0x4d   :  { %558 = vmatpush3.msra.mxu0 %v117_v2  ;;  %250 = vmatpush1.msra.mxu1 %v215_v5  ;;  %v212_v11 = vld [vmem:[#allocation8 + $0x58] sm:$0xff]  ;;  %v211_v13 = vld [vmem:[#allocation8 + $0x50] sm:$0xff]  ;;  %v318_v14 = vld [vmem:[#allocation10 + $0x68] sm:$0xff]  ;;  %v221_v46 = vsub.s32 0, %v220_v45  ;;  %v225_v57 = vsub.s32 1, %v220_v45  ;;  %p724_p2 = scmp.ne.s32.totalorder %s524_s1, %s723_s28  ;;  %p729_p4 = scmp.lt.s32.totalorder %s723_s28, %s723_s28 }
  0x4e   :  { %559 = vmatprep.subr.mxu0 %v763_v0  ;;  %251 = vmatprep.subr.mxu1 %v214_v6  ;;  %v210_v15 = vld [vmem:[#allocation8 + $0x48] sm:$0xff]  ;;  %v317_v16 = vld [vmem:[#allocation10 + $0x60] sm:$0xff]  ;;  %v316_v18 = vld [vmem:[#allocation10 + $0x58] sm:$0xff] }
  0x4f   :  { %560 = vmatpush3.msra.mxu0 %v116_v3  ;;  %252 = vmatpush1.msra.mxu1 %v213_v8  ;;  %v209_v17 = vld [vmem:[#allocation8 + $0x40] sm:$0xff]  ;;  %v208_v19 = vld [vmem:[#allocation8 + $0x38] sm:$0xff]  ;;  %v315_v20 = vld [vmem:[#allocation10 + $0x50] sm:$0xff]  ;;  %p730_p5 = por %p729_p4, %p728_p3 }
  0x50   :  { %561 = vmatprep.subr.mxu0 %v763_v0  ;;  %253 = vmatprep.subr.mxu1 %v212_v11  ;;  %v207_v21 = vld [vmem:[#allocation8 + $0x30] sm:$0xff]  ;;  %v314_v22 = vld [vmem:[#allocation10 + $0x48] sm:$0xff]  ;;  %v313_v24 = vld [vmem:[#allocation10 + $0x40] sm:$0xff] }
  0x51   :  { %562 = vmatpush3.msra.mxu0 %v115_v7  ;;  %254 = vmatpush1.msra.mxu1 %v211_v13  ;;  %v206_v23 = vld [vmem:[#allocation8 + $0x28] sm:$0xff]  ;;  %v312_v25 = vld [vmem:[#allocation10 + $0x38] sm:$0xff]  ;;  %v311_v26 = vld [vmem:[#allocation10 + $0x30] sm:$0xff]  ;;  %p731_p6 = pnand %p730_p5, %p724_p2 }
  0x52   :  { %564 = vmatmul.mubr.msk.f32.vlgmr.msra.gmra.mxu0 %vm126_vm1, %v114_v9  ;;  %352 = vmatprep.subr.mxu0 %v320_v10  ;;  %v310_v27 = vld [vmem:[#allocation10 + $0x28] sm:$0xff]  ;;  %v309_v28 = vld [vmem:[#allocation10 + $0x20] sm:$0xff]  ;;  %v308_v29 = vld [vmem:[#allocation10 + $0x18] sm:$0xff] }
  0x53   :  { %353 = vmatpush1.msra.mxu0 %v319_v12  ;;  %255 = vmatprep.subr.mxu1 %v210_v15  ;;  %v205_v30 = vld [vmem:[#allocation8 + $0x20] sm:$0xff]  ;;  %v307_v31 = vld [vmem:[#allocation10 + $0x10] sm:$0xff]  ;;  %v204_v32 = vld [vmem:[#allocation8 + $0x18] sm:$0xff] }
  0x54   :  { %354 = vmatprep.subr.mxu0 %v318_v14  ;;  %256 = vmatpush1.msra.mxu1 %v209_v17  ;;  %v306_v33 = vld [vmem:[#allocation10 + $0x8] sm:$0xff]  ;;  %v203_v34 = vld [vmem:[#allocation8 + $0x10] sm:$0xff]  ;;  %v305_v35 = vld [vmem:[#allocation10] sm:$0xff] }
  0x55   :  { %355 = vmatpush1.msra.mxu0 %v317_v16  ;;  %257 = vmatprep.subr.mxu1 %v208_v19  ;;  %v202_v36 = vld [vmem:[#allocation8 + $0x8] sm:$0xff]  ;;  %v304_v37 = vld [vmem:[#allocation5] sm:$0xff]  ;;  %v201_v38 = vld [vmem:[#allocation8] sm:$0xff] }
  0x56   :  { %356 = vmatprep.subr.mxu0 %v316_v18  ;;  %258 = vmatpush1.msra.mxu1 %v207_v21  ;;  %v535_v39 = vld [vmem:[%s885_s3] ss:$0 sm:$0xff]  ;;  %v433_v6 = vld [vmem:[#allocation11 + $0x38] sm:$0xff]  ;;  %v431_v8 = vld [vmem:[#allocation11 + $0x28] sm:$0xff]  ;;  %s765_s3 = smov 64  }
  0x57   :  { %357 = vmatpush1.msra.mxu0 %v315_v20  ;;  %259 = vmatprep.subr.mxu1 %v206_v23  ;;  %v321_v47 = vld [vmem:[%s889_s7] sm:$0x3]  ;;  %v430_v10 = vld [vmem:[#allocation11 + $0x20] sm:$0xff]  ;;  %v429_v11 = vld [vmem:[#allocation11 + $0x18] sm:$0xff] }
  0x58   :  { %358 = vmatprep.subr.mxu0 %v314_v22  ;;  %400 = vmatprep.mubr.f32.mxu0 %v763_v0  ;;  %v217_v48 = vld [vmem:[%s887_s5] sm:$0x3]  ;;  %v326_v49 = vrot.slane %v321_v47, %v221_v46  ;;  %v330_v58 = vrot.slane %v321_v47, %v225_v57  ;;  %v427_v13 = vld [vmem:[#allocation11 + $0x8] sm:$0xff]  ;;  %v426_v14 = vld [vmem:[#allocation11] sm:$0xff] }
  0x59   :  { %359 = vmatpush1.msra.mxu0 %v313_v24  ;;  %260 = vmatpush1.msra.mxu1 %v205_v30  ;;  %v222_v50 = vrot.slane %v217_v48, %v221_v46  ;;  %v226_v62 = vrot.slane %v217_v48, %v225_v57  ;;  %v432_v7 = vld [vmem:[#allocation11 + $0x30] sm:$0xff] }
  0x5a   :  { %360 = vmatprep.subr.mxu0 %v312_v25  ;;  %261 = vmatprep.subr.mxu1 %v204_v32  ;;  %v428_v12 = vld [vmem:[#allocation11 + $0x10] sm:$0xff] }
  0x5b   :  { %361 = vmatpush1.msra.mxu0 %v311_v26  ;;  %262 = vmatpush1.msra.mxu1 %v203_v34  ;;  %v539_v22 = vld [vmem:[%s891_s9] ss:$0 sm:$0xff] }
  0x5c   :  { %362 = vmatprep.subr.mxu0 %v310_v27  ;;  %263 = vmatprep.subr.mxu1 %v202_v36 }
  0x5d   :  { %363 = vmatpush1.msra.mxu0 %v309_v28  ;;  %264 = vmatpush1.msra.mxu1 %v201_v38 }
  0x5e   :  { %364 = vmatprep.subr.mxu0 %v308_v29  ;;  %566 = vmatprep.subr.mxu1 %v763_v0 }
  0x5f   :  { %365 = vmatpush1.msra.mxu0 %v307_v31 }
  0x60   :  { %366 = vmatprep.subr.mxu0 %v306_v33 }
  0x61   :  { %367 = vmatpush1.msra.mxu0 %v305_v35 }
  0x62   :  { %538 = vmatmul.mubr.msk.f32.vlgmr.msra.gmra.mxu0 %vm229_vm2, %v304_v37 }
 0x112   :  { %v196_v40 = vpop.f32.mrf.mxu0 }
 0x113   :  { %v197_v41 = vadd.f32 %v535_v39, %v196_v40 }
 0x114   :  { %v565_v42 = vpop.f32.mrf.mxu0 }
 0x115   :  { %v200_v43 = vmax.f32 %v197_v41, 0.0 }
 0x117   :  { %537 = vmatmul.mubr.msk.f32.vlgmr.msra.gmra.mxu1 %vm229_vm2, %v200_v43 }
 0x118   :  { %582 = vmatprep.mubr.msk.f32.mxu1 %vm764_vm0, %v763_v0  ;;  %567 = vmatpush3.msra.mxu1 %v433_v6 }
 0x119   :  { %568 = vmatprep.subr.mxu1 %v763_v0 }
 0x11a   :  { %569 = vmatpush3.msra.mxu1 %v432_v7 }
 0x11b   :  { %570 = vmatprep.subr.mxu1 %v763_v0 }
 0x11c   :  { %571 = vmatpush3.msra.mxu1 %v431_v8 }
 0x11d   :  { %572 = vmatprep.subr.mxu1 %v763_v0 }
 0x11e   :  { %573 = vmatpush3.msra.mxu1 %v430_v10 }
 0x11f   :  { %574 = vmatprep.subr.mxu1 %v763_v0 }
 0x120   :  { %575 = vmatpush3.msra.mxu1 %v429_v11 }
 0x121   :  { %576 = vmatprep.subr.mxu1 %v763_v0 }
 0x122   :  { %v402_v51 = vpop.f32.mrf.mxu0  ;;  %577 = vmatpush3.msra.mxu1 %v428_v12 }
 0x123   :  { %v403_v52 = vadd.f32 %v402_v51, %v326_v49  ;;  %578 = vmatprep.subr.mxu1 %v763_v0 }
 0x124   :  { %v404_v60 = vpop.f32.mrf.mxu0  ;;  %579 = vmatpush3.msra.mxu1 %v427_v13 }
 0x125   :  { %v405_v1 = vadd.f32 %v404_v60, %v330_v58  ;;  %580 = vmatprep.subr.mxu1 %v763_v0 }
 0x126   :  { %581 = vmatpush3.msra.mxu1 %v426_v14 }
 0x1d7   :  { %v299_v53 = vpop.f32.mrf.mxu1 }
 0x1d8   :  { %v300_v54 = vadd.f32 %v299_v53, %v222_v50 }
 0x1d9   :  { %v301_v63 = vpop.f32.mrf.mxu1 }
 0x1da   :  { %v407_v55 = vadd.f32 %v403_v52, %v300_v54  ;;  %v302_v4 = vadd.f32 %v301_v63, %v226_v62 }
 0x1dc   :  { %v408_v56 = vmul.f32 0.5, %v407_v55 }
 0x1de   :  { %599 = vtanh.f32 %v408_v56 }
 0x1eb   :  { %v600_v59 = vpop.eup %599 }
 0x1ec   :  { %v410_v61 = vmul.f32 0.5, %v600_v59 }
 0x1ee   :  { %v411_v2 = vadd.f32 0.5, %v410_v61 }
 0x1f0   :  { %v412_v3 = vmul.f32 %v411_v2, %v405_v1  ;;  %v415_v16 = vsub.f32 1.0, %v411_v2 }
 0x1f2   :  { %v413_v5 = vadd.f32 %v412_v3, %v302_v4 }
 0x1f4   :  { %601 = vtanh.f32 %v413_v5 }
 0x201   :  { %v602_v9 = vpop.eup %601 }
 0x202   :  { %417 = vrot.lane.b32.xlu0 %v602_v9, %s765_s3 }
 0x206   :  { %421 = vrot.lane.b32.xlu0 %v304_v37, %s765_s3 }
 0x274   :  { %v418_v15 = vpop.permute.xlu0 %417 }
 0x275   :  { %v420_v18 = vmul.f32 %v418_v15, %v415_v16 }
 0x278   :  { %v422_v17 = vpop.permute.xlu0 %421 }
 0x279   :  { %v424_v19 = vmul.f32 %v422_v17, %v411_v2 }
 0x27b   :  { %v425_v20 = vadd.f32 %v424_v19, %v420_v18 }
 0x27d   :  { %442 = vrot.lane.b32.xlu1 %v425_v20, %s765_s3 }
 0x2ef   :  { %v443_v21 = vpop.permute.xlu1 %442 }
 0x2f0   :  { %583 = vmatmul.mubr.msk.f32.vlgmr.msra.gmra.mxu1 %vm229_vm2, %v443_v21 }
 0x3b0   :  { %v512_v23 = vpop.f32.mrf.mxu1 }
 0x3b1   :  { %v513_v24 = vadd.f32 %v539_v22, %v512_v23 }
 0x3b2   :  { %v584_v0 = vpop.f32.mrf.mxu1 }
 0x3b3   :  { %516 = vst [vmem:[#allocation13] sm:$0xff] %v513_v24 }
 0x3b4   :  { %734 = shalt.err (!%p731_p6)
}
 0x3b5   :  { %526 = dma.vmem_to_hbm [thread:$0]  %s524_s1, 128, %s892_s10, [#allocation4]  }
 0x3b6   :  { %751 = dma.done.wait [#allocation4], 128  }
 0x3b7   :  { %752 = vsyncadd [#allocation4], 4294967168 }
 0x3b8   :  { %530 = vsyncpa [#allocation3], 1 }
 0x3b9   :  { %531 = vsyncpa [#allocation6], 1 }
 0x3ba   :  { %532 = vsyncpa [#allocation9], 1 }
 0x3bb   :  { %533 = vsyncpa [#allocation12], 1 }
 0x3bc   :  { %534 = vsyncpa [#allocation4], 1 }

</bundles_post_ra>
